<compile_context>
chip_gen: v7x
topology: tpu7x:2x2x1
jax: 0.10.0
libtpu: 0.0.40
codegen_flags: <defaults>
</compile_context>

<pallas_src>
import jax
import jax.numpy as jnp
from jax.experimental import pallas as pl
from jax.experimental.pallas import tpu as pltpu


def _halves_max_kernel(x_ref, o_ref):
    """out = elementwise max of the left and right lane-halves of the block."""
    x = x_ref[...]                                   # (tr, lane) float32
    half = x.shape[-1] // 2
    o_ref[...] = jnp.maximum(x[:, :half], x[:, half:])


def _pick_block_rows(total_rows, lane_width, target_bytes=2 << 20, min_grid=2):
    """Rows per grid step: a multiple of 8, ~target_bytes of (lane-padded) VMEM
    per input tile, and >= min_grid grid steps when possible so v7x's two
    TensorCores and the DMA pipeline have work to overlap."""
    padded_row_bytes = ((lane_width + 127) // 128) * 128 * 4   # f32, 128-lane tiles
    tr = max(1, target_bytes // padded_row_bytes)
    if total_rows < 8:
        return total_rows
    tr = max(8, (min(tr, total_rows) // 8) * 8)
    if total_rows > 8 and pl.cdiv(total_rows, tr) < min_grid:
        tr = max(8, ((pl.cdiv(total_rows, min_grid) + 7) // 8) * 8)
    return min(tr, total_rows)


def _complex_to_pairs(x):
    """complex64 (n,c,h,w) -> (pairs, dj_folded).

    Fast path: zero-copy bitcast view, pairs = (n,c,h,w,2) float32 [re, im],
    dj_folded=False.  Fallback (backend rejects complex bitcasts): one fused
    extraction pass that also folds the column-pair max, pairs =
    (n,c,h,w//2,2), dj_folded=True."""
    try:
        return jax.lax.bitcast_convert_type(x, jnp.float32), False
    except Exception:
        n, c, h, w = x.shape
        re = jnp.real(x).reshape(n, c, h, w // 2, 2)
        im = jnp.imag(x).reshape(n, c, h, w // 2, 2)
        pairs = jnp.stack([jnp.maximum(re[..., 0], re[..., 1]),
                           jnp.maximum(im[..., 0], im[..., 1])], axis=-1)
        return pairs, True


def _pairs_to_complex(pairs):
    """float32 (..., 2) [re, im] -> complex64 (...); zero-copy when possible."""
    try:
        return jax.lax.bitcast_convert_type(pairs, jnp.complex64)
    except Exception:
        return jax.lax.complex(pairs[..., 0], pairs[..., 1])


@jax.jit
def complex_maxpool2d(x):
    """ComplexPool.forward: torch.complex(pool(x.real), pool(x.imag)) with a
    2x2 / stride-2 max pool, for complex64 NCHW input."""
    assert x.ndim == 4, "expected NCHW"
    assert x.dtype == jnp.complex64, "TPU kernel supports complex64 input"
    n, c, h, w = x.shape
    assert h % 2 == 0 and w % 2 == 0, "MaxPool2d(2,2) with no padding"
    ho, wo = h // 2, w // 2

    pairs, dj_folded = _complex_to_pairs(x)
    # One (even, odd) image-row pair per slab row; the two rows sit back to
    # back along the lane dim.  lane = 4*w (fast path) or 2*w (fallback).
    lane = pairs.shape[3] * 4
    half = lane // 2
    rows = n * c * ho
    v = pairs.reshape(rows, lane)                     # zero-copy reshape

    tr = _pick_block_rows(rows, lane)
    grid = (pl.cdiv(rows, tr),)

    row_max = pl.pallas_call(
        _halves_max_kernel,
        out_shape=jax.ShapeDtypeStruct((rows, half), jnp.float32),
        grid=grid,
        in_specs=[pl.BlockSpec((tr, lane), lambda i: (i, 0))],
        out_specs=pl.BlockSpec((tr, half), lambda i: (i, 0)),
        compiler_params=pltpu.CompilerParams(
            dimension_semantics=("parallel",),
            vmem_limit_bytes=32 * 1024 * 1024),
        cost_estimate=pl.CostEstimate(
            flops=rows * half,
            transcendentals=0,
            bytes_accessed=4 * rows * (lane + half)),
    )(v)

    if dj_folded:
        # Fallback path: the column-pair max was already folded into the
        # prologue; just reassemble the complex output.
        pooled = row_max.reshape(n, c, ho, wo, 2)
        return jax.lax.complex(pooled[..., 0], pooled[..., 1])

    # Fast-path epilogue: fold the column-pair (dj) max on the half-sized
    # intermediate and bitcast straight back to complex64 (fuses into one
    # small XLA pass; no stack / transpose).
    rm = row_max.reshape(n, c, ho, wo, 2, 2)              # (..., dj, re/im)
    pooled = jnp.maximum(rm[..., 0, :], rm[..., 1, :])    # (n, c, ho, wo, 2)
    return _pairs_to_complex(pooled)


if __name__ == "__main__":
    key = jax.random.PRNGKey(0)
    k_re, k_im = jax.random.split(key)
    n, c, h, w = 2, 4, 16, 16
    x_re = jax.random.normal(k_re, (n, c, h, w), dtype=jnp.float32)
    x_im = jax.random.normal(k_im, (n, c, h, w), dtype=jnp.float32)
    x = jax.lax.complex(x_re, x_im)                       # complex64 NCHW

    out = jax.block_until_ready(complex_maxpool2d(x))

    # Reference: XLA reduce_window (exact for max pooling).
    def ref_pool(a):
        return jax.lax.reduce_window(
            a, -jnp.inf, jax.lax.max, (1, 1, 2, 2), (1, 1, 2, 2), "VALID")

    expected = jax.lax.complex(ref_pool(x_re), ref_pool(x_im))
    assert out.shape == (n, c, h // 2, w // 2), out.shape
    assert out.dtype == jnp.complex64, out.dtype
    assert bool(jnp.all(out == expected)), "mismatch vs reference max pool"

    print("KERNEL_OK")
</pallas_src>

<mosaic_0001>
module attributes {stable_mosaic.version = 11 : i64} {
  func.func @_halves_max_kernel(%arg0: i32, %arg1: memref<32x32xf32, #tpu.memory_space<vmem>>, %arg2: memref<32x16xf32, #tpu.memory_space<vmem>>) attributes {dimension_semantics = [#tpu.dimension_semantics<parallel>], iteration_bounds = array<i64: 2>, scalar_prefetch = 0 : i64, scratch_operands = 0 : i64, tpu.core_type = #tpu.core_type<tc>, window_params = [{transform_indices = @transform_0, window_bounds = array<i64: 32, 32>}, {transform_indices = @transform_1, window_bounds = array<i64: 32, 16>}]} {
    %c0 = arith.constant 0 : index
    %c0_0 = arith.constant 0 : index
    %0 = vector.load %arg1[%c0, %c0_0] : memref<32x32xf32, #tpu.memory_space<vmem>>, vector<32x32xf32>
    %1 = vector.extract_strided_slice %0 {offsets = [0, 0], sizes = [32, 16], strides = [1, 1]} : vector<32x32xf32> to vector<32x16xf32>
    %2 = vector.extract_strided_slice %0 {offsets = [0, 16], sizes = [32, 16], strides = [1, 1]} : vector<32x32xf32> to vector<32x16xf32>
    %3 = arith.maximumf %1, %2 : vector<32x16xf32>
    %c0_1 = arith.constant 0 : index
    %c0_2 = arith.constant 0 : index
    %4 = vector.load %arg2[%c0_1, %c0_2] : memref<32x16xf32, #tpu.memory_space<vmem>>, vector<32x16xf32>
    tpu.vector_store %arg2[%c0_1, %c0_2], %3 {strides = array<i32>} : memref<32x16xf32, #tpu.memory_space<vmem>>, vector<32x16xf32>,
    return
  }
  func.func @transform_0(%arg0: i32) -> (i32, i32) {
    %c0_i32 = arith.constant 0 : i32
    %c0_i32_0 = arith.constant 0 : i32
    return %arg0, %c0_i32 : i32, i32
  }
  func.func @transform_1(%arg0: i32) -> (i32, i32) {
    %c0_i32 = arith.constant 0 : i32
    %c0_i32_0 = arith.constant 0 : i32
    return %arg0, %c0_i32 : i32, i32
  }
}

</mosaic_0001>

<bundles_post_ra>
// kernel: custom-call
= control target key start
LH: loop header
LB: loop body
LE: loop exit
PB: predicated region body
PF: predicated region fallthrough
CT: control target
= control target key end

     0   :  { %s200_s0 = inlined_call_operand.vmem [shape: c64[2,4,16,16], index: 0, kind: input, shape index: {}]   ;;  %s201_s1 = inlined_call_operand.vmem [shape: f32[2,4,16,16], index: 1, kind: output, shape index: {}]  }
   0x1   :  { %v2_v0 = vld [vmem:[%s200_s0] sm:$0xff]  ;;  %v64_v1 = vld [vmem:[%s200_s0 + $0x8] sm:$0xff]  ;;  %v66_v2 = vld [vmem:[%s200_s0 + $0x10] sm:$0xff] }
   0x2   :  { %3 = vst [vmem:[%s201_s1] sm:$0xff] %v2_v0  ;;  %65 = vst [vmem:[%s201_s1 + $0x8] sm:$0xff] %v64_v1  ;;  %v68_v3 = vld [vmem:[%s200_s0 + $0x18] sm:$0xff]  ;;  %v70_v4 = vld [vmem:[%s200_s0 + $0x20] sm:$0xff] }
   0x3   :  { %67 = vst [vmem:[%s201_s1 + $0x10] sm:$0xff] %v66_v2  ;;  %v72_v5 = vld [vmem:[%s200_s0 + $0x28] sm:$0xff]  ;;  %69 = vst [vmem:[%s201_s1 + $0x18] sm:$0xff] %v68_v3  ;;  %v74_v6 = vld [vmem:[%s200_s0 + $0x30] sm:$0xff] }
   0x4   :  { %71 = vst [vmem:[%s201_s1 + $0x20] sm:$0xff] %v70_v4  ;;  %73 = vst [vmem:[%s201_s1 + $0x28] sm:$0xff] %v72_v5  ;;  %v76_v7 = vld [vmem:[%s200_s0 + $0x38] sm:$0xff]  ;;  %v78_v8 = vld [vmem:[%s200_s0 + $0x40] sm:$0xff] }
   0x5   :  { %75 = vst [vmem:[%s201_s1 + $0x30] sm:$0xff] %v74_v6  ;;  %77 = vst [vmem:[%s201_s1 + $0x38] sm:$0xff] %v76_v7  ;;  %v80_v9 = vld [vmem:[%s200_s0 + $0x48] sm:$0xff]  ;;  %v82_v10 = vld [vmem:[%s200_s0 + $0x50] sm:$0xff] }
   0x6   :  { %79 = vst [vmem:[%s201_s1 + $0x40] sm:$0xff] %v78_v8  ;;  %v84_v11 = vld [vmem:[%s200_s0 + $0x58] sm:$0xff]  ;;  %81 = vst [vmem:[%s201_s1 + $0x48] sm:$0xff] %v80_v9  ;;  %v86_v12 = vld [vmem:[%s200_s0 + $0x60] sm:$0xff] }
   0x7   :  { %83 = vst [vmem:[%s201_s1 + $0x50] sm:$0xff] %v82_v10  ;;  %85 = vst [vmem:[%s201_s1 + $0x58] sm:$0xff] %v84_v11  ;;  %v88_v13 = vld [vmem:[%s200_s0 + $0x68] sm:$0xff]  ;;  %v90_v14 = vld [vmem:[%s200_s0 + $0x70] sm:$0xff] }
   0x8   :  { %87 = vst [vmem:[%s201_s1 + $0x60] sm:$0xff] %v86_v12  ;;  %89 = vst [vmem:[%s201_s1 + $0x68] sm:$0xff] %v88_v13  ;;  %v92_v15 = vld [vmem:[%s200_s0 + $0x78] sm:$0xff] }
   0x9   :  { %91 = vst [vmem:[%s201_s1 + $0x70] sm:$0xff] %v90_v14  ;;  %93 = vst [vmem:[%s201_s1 + $0x78] sm:$0xff] %v92_v15 }

// kernel: custom-call.1
= control target key start
LH: loop header
LB: loop body
LE: loop exit
PB: predicated region body
PF: predicated region fallthrough
CT: control target
= control target key end

     0   :  { %s217_s0 = inlined_call_operand.vmem [shape: c64[2,4,16,16], index: 0, kind: input, shape index: {}]   ;;  %s218_s1 = inlined_call_operand.vmem [shape: f32[2,4,16,16], index: 1, kind: output, shape index: {}]  }
   0x1   :  { %v80_v0 = vld [vmem:[%s217_s0 + $0x80] sm:$0xff]  ;;  %v81_v1 = vld [vmem:[%s217_s0 + $0x88] sm:$0xff]  ;;  %v83_v2 = vld [vmem:[%s217_s0 + $0x90] sm:$0xff] }
   0x2   :  { %4 = vst [vmem:[%s218_s1] sm:$0xff] %v80_v0  ;;  %82 = vst [vmem:[%s218_s1 + $0x8] sm:$0xff] %v81_v1  ;;  %v85_v3 = vld [vmem:[%s217_s0 + $0x98] sm:$0xff]  ;;  %v87_v4 = vld [vmem:[%s217_s0 + $0xa0] sm:$0xff] }
   0x3   :  { %84 = vst [vmem:[%s218_s1 + $0x10] sm:$0xff] %v83_v2  ;;  %v89_v5 = vld [vmem:[%s217_s0 + $0xa8] sm:$0xff]  ;;  %86 = vst [vmem:[%s218_s1 + $0x18] sm:$0xff] %v85_v3  ;;  %v91_v6 = vld [vmem:[%s217_s0 + $0xb0] sm:$0xff] }
   0x4   :  { %88 = vst [vmem:[%s218_s1 + $0x20] sm:$0xff] %v87_v4  ;;  %90 = vst [vmem:[%s218_s1 + $0x28] sm:$0xff] %v89_v5  ;;  %v93_v7 = vld [vmem:[%s217_s0 + $0xb8] sm:$0xff]  ;;  %v95_v8 = vld [vmem:[%s217_s0 + $0xc0] sm:$0xff] }
   0x5   :  { %92 = vst [vmem:[%s218_s1 + $0x30] sm:$0xff] %v91_v6  ;;  %94 = vst [vmem:[%s218_s1 + $0x38] sm:$0xff] %v93_v7  ;;  %v97_v9 = vld [vmem:[%s217_s0 + $0xc8] sm:$0xff]  ;;  %v99_v10 = vld [vmem:[%s217_s0 + $0xd0] sm:$0xff] }
   0x6   :  { %96 = vst [vmem:[%s218_s1 + $0x40] sm:$0xff] %v95_v8  ;;  %v101_v11 = vld [vmem:[%s217_s0 + $0xd8] sm:$0xff]  ;;  %98 = vst [vmem:[%s218_s1 + $0x48] sm:$0xff] %v97_v9  ;;  %v103_v12 = vld [vmem:[%s217_s0 + $0xe0] sm:$0xff] }
   0x7   :  { %100 = vst [vmem:[%s218_s1 + $0x50] sm:$0xff] %v99_v10  ;;  %102 = vst [vmem:[%s218_s1 + $0x58] sm:$0xff] %v101_v11  ;;  %v105_v13 = vld [vmem:[%s217_s0 + $0xe8] sm:$0xff]  ;;  %v107_v14 = vld [vmem:[%s217_s0 + $0xf0] sm:$0xff] }
   0x8   :  { %104 = vst [vmem:[%s218_s1 + $0x60] sm:$0xff] %v103_v12  ;;  %106 = vst [vmem:[%s218_s1 + $0x68] sm:$0xff] %v105_v13  ;;  %v109_v15 = vld [vmem:[%s217_s0 + $0xf8] sm:$0xff] }
   0x9   :  { %108 = vst [vmem:[%s218_s1 + $0x70] sm:$0xff] %v107_v14  ;;  %110 = vst [vmem:[%s218_s1 + $0x78] sm:$0xff] %v109_v15 }

// kernel: custom-call.2
= control target key start
LH: loop header
LB: loop body
LE: loop exit
PB: predicated region body
PF: predicated region fallthrough
CT: control target
= control target key end

     0   :  { %s212_s0 = inlined_call_operand.vmem [shape: f32[2,4,8,8], index: 0, kind: input, shape index: {}]   ;;  %s213_s1 = inlined_call_operand.vmem [shape: f32[2,4,8,8], index: 1, kind: input, shape index: {}]   ;;  %s214_s2 = inlined_call_operand.vmem [shape: c64[2,4,8,8], index: 2, kind: output, shape index: {}]  }
   0x1   :  { %v5_v0 = vld [vmem:[%s212_s0] sm:$0xff]  ;;  %v72_v1 = vld [vmem:[%s212_s0 + $0x8] sm:$0xff]  ;;  %v74_v2 = vld [vmem:[%s212_s0 + $0x10] sm:$0xff] }
   0x2   :  { %6 = vst [vmem:[%s214_s2] sm:$0xff] %v5_v0  ;;  %73 = vst [vmem:[%s214_s2 + $0x8] sm:$0xff] %v72_v1  ;;  %v76_v3 = vld [vmem:[%s212_s0 + $0x18] sm:$0xff]  ;;  %v78_v4 = vld [vmem:[%s212_s0 + $0x20] sm:$0xff] }
   0x3   :  { %75 = vst [vmem:[%s214_s2 + $0x10] sm:$0xff] %v74_v2  ;;  %v80_v5 = vld [vmem:[%s212_s0 + $0x28] sm:$0xff]  ;;  %77 = vst [vmem:[%s214_s2 + $0x18] sm:$0xff] %v76_v3  ;;  %v82_v6 = vld [vmem:[%s212_s0 + $0x30] sm:$0xff] }
   0x4   :  { %79 = vst [vmem:[%s214_s2 + $0x20] sm:$0xff] %v78_v4  ;;  %81 = vst [vmem:[%s214_s2 + $0x28] sm:$0xff] %v80_v5  ;;  %v84_v7 = vld [vmem:[%s212_s0 + $0x38] sm:$0xff]  ;;  %v35_v8 = vld [vmem:[%s213_s1] sm:$0xff] }
   0x5   :  { %83 = vst [vmem:[%s214_s2 + $0x30] sm:$0xff] %v82_v6  ;;  %85 = vst [vmem:[%s214_s2 + $0x38] sm:$0xff] %v84_v7  ;;  %v87_v9 = vld [vmem:[%s213_s1 + $0x8] sm:$0xff]  ;;  %v89_v10 = vld [vmem:[%s213_s1 + $0x10] sm:$0xff] }
   0x6   :  { %86 = vst [vmem:[%s214_s2 + $0x40] sm:$0xff] %v35_v8  ;;  %v91_v11 = vld [vmem:[%s213_s1 + $0x18] sm:$0xff]  ;;  %88 = vst [vmem:[%s214_s2 + $0x48] sm:$0xff] %v87_v9  ;;  %v93_v12 = vld [vmem:[%s213_s1 + $0x20] sm:$0xff] }
   0x7   :  { %90 = vst [vmem:[%s214_s2 + $0x50] sm:$0xff] %v89_v10  ;;  %92 = vst [vmem:[%s214_s2 + $0x58] sm:$0xff] %v91_v11  ;;  %v95_v13 = vld [vmem:[%s213_s1 + $0x28] sm:$0xff]  ;;  %v97_v14 = vld [vmem:[%s213_s1 + $0x30] sm:$0xff] }
   0x8   :  { %94 = vst [vmem:[%s214_s2 + $0x60] sm:$0xff] %v93_v12  ;;  %96 = vst [vmem:[%s214_s2 + $0x68] sm:$0xff] %v95_v13  ;;  %v99_v15 = vld [vmem:[%s213_s1 + $0x38] sm:$0xff] }
   0x9   :  { %98 = vst [vmem:[%s214_s2 + $0x70] sm:$0xff] %v97_v14  ;;  %100 = vst [vmem:[%s214_s2 + $0x78] sm:$0xff] %v99_v15 }

// kernel: complex_maxpool2d.1
= control target key start
LH: loop header
LB: loop body
LE: loop exit
PB: predicated region body
PF: predicated region fallthrough
CT: control target
= control target key end

     0   :  { %s244_s6 = smov 0   ;;  %s261_s0 = inlined_call_operand.vmem [shape: f32[64,32], index: 0, kind: input, shape index: {}]   ;;  %s262_s1 = inlined_call_operand.vmem [shape: f32[64,16], index: 1, kind: output, shape index: {}]  }
   0x1 LB: > { %s205_s7 = sadd.s32 4294967295, %s231_s6   ;;  %p209_p0 = scmp.ge.s32.totalorder %s231_s6, 1  ;;  %s231_s6 = sphi %s244_s6, %s11_s6  }
   0x2   : > { %p88_p1 = scmp.lt.s32.totalorder %s231_s6, 3 }
   0x4   : > { %p89_p2 = pnand %p209_p0, %p88_p1 }
   0x5   : > { %s210_s8 = sshll.u32 (!%p89_p2), %s205_s7, 2  ;;  %s233_s13 = smov (!%p89_p2), 112   ;;  %vm144_vm0 = vcmask (!%p89_p2), 130048  }
   0x6   : > { %92 = sbr.rel (%p89_p2) target bundleno = 139 (0x8b), region = 24  ;;  %p109_p3 = scmp.lt.s32.totalorder (!%p89_p2), %s210_s8, 7 }
   0xd   : > { %s264_s8 = smov (!%p109_p3, %s210_s8), 7 }
   0xe   : > { %s211_s9 = sshll.u32 %s264_s8, 3 }
   0xf   : > { %s112_s12 = scalar_lea.vmem %s261_s0, %s211_s9  ;;  %s118_s16 = scalar_lea.vmem %s262_s1, %s211_s9 }
  0x10   : > { %v120_v0 = vld [vmem:[%s112_s12] sm:$0xff]  ;;  %v122_v1 = vld [vmem:[%s112_s12 + $0x10] sm:$0xff]  ;;  %v121_v2 = vld [vmem:[%s112_s12 + $0x8] sm:$0xff] }
  0x11   : > { %128 = vrot.lane.b32.xlu0 %v120_v0, %s233_s13  ;;  %132 = vrot.lane.b32.xlu1 %v122_v1, %s233_s13  ;;  %v123_v3 = vld [vmem:[%s112_s12 + $0x18] sm:$0xff] }
  0x15   : > { %130 = vrot.lane.b32.xlu0 %v121_v2, %s233_s13  ;;  %134 = vrot.lane.b32.xlu1 %v123_v3, %s233_s13 }
  0x83   : > { %v129_v4 = vpop.permute.xlu0 %128  ;;  %v133_v5 = vpop.permute.xlu1 %132 }
  0x84   : > { %v140_v6 = vmax.f32 %v120_v0, %v129_v4  ;;  %v142_v11 = vmax.f32 %v122_v1, %v133_v5 }
  0x86   : > { %145 = vst.msk [vmem:[%s118_s16] sm:$0xff] %vm144_vm0, %v140_v6  ;;  %147 = vst.msk [vmem:[%s118_s16 + $0x10] sm:$0xff] %vm144_vm0, %v142_v11 }
  0x87   : > { %v131_v7 = vpop.permute.xlu0 %130  ;;  %v135_v8 = vpop.permute.xlu1 %134 }
  0x88   : > { %v141_v9 = vmax.f32 %v121_v2, %v131_v7  ;;  %v143_v10 = vmax.f32 %v123_v3, %v135_v8 }
  0x8a   : > { %146 = vst.msk [vmem:[%s118_s16 + $0x8] sm:$0xff] %vm144_vm0, %v141_v9  ;;  %148 = vst.msk [vmem:[%s118_s16 + $0x18] sm:$0xff] %vm144_vm0, %v143_v10 }
  0x8b PF: > { %s11_s6 = sadd.s32 1, %s231_s6  }
  0x8c   : > { %p8_p4 = scmp.ge.s32.totalorder %s11_s6, 4  }
  0x8e   :  { %10 = sbr.rel (!%p8_p4) target bundleno = 1 (0x1), region = 54 }

</bundles_post_ra>
